<compile_context>
chip_gen: v6e
topology: v6e:2x2x1
jax: 0.10.0
libtpu: 0.0.40
codegen_flags: <defaults>
</compile_context>

<pallas_src>
import functools

import jax
import jax.numpy as jnp
from jax.experimental import pallas as pl
from jax.experimental.pallas import tpu as pltpu

# ----------------------------- model config ---------------------------------
HIDDEN = 32          # args.hidden_size
FFN_HIDDEN = 64      # args.ffn_hidden_size
DEPTH = 3            # MPNEncoder message-passing depth
ATOM_FDIM = 8        # atom feature dim
BOND_FDIM = 16       # bond feature dim (chemprop concatenates atom+bond feats)

NUM_MOLS = 2         # batch size
ATOMS_PER_MOL = 8
NUM_ATOMS = NUM_MOLS * ATOMS_PER_MOL             # 16
NUM_BONDS = NUM_MOLS * (ATOMS_PER_MOL - 1) * 2   # 28 directed bonds (chains)
NB_PAD = 32          # directed bonds padded to a sublane multiple of 8
NUM_VIEWS = 2        # two contrastive views, stacked on the lane axis


# ------------------------------- kernel -------------------------------------
def mpn_header_kernel(f_atoms_ref, f_bonds_ref, a_b2b_ref, a_a2b_ref,
                      m_scope_ref, w_i_ref, w_h_ref, w_oa_ref, w_om_ref,
                      b_o_ref, w_head_ref, b_head_ref, out_ref):
    """D-MPNN encoder + header; both contrastive views fused on the lane axis.

    All "view-fused" operands carry view 0 in columns [:W] and view 1 in
    columns [W:]; weights are block_diag(W, W), so one matmul = both views.
    """
    dot = functools.partial(jnp.dot, preferred_element_type=jnp.float32)

    # chemprop: input = W_i(f_bonds) (pre-activation), message = act(input)
    h_in = dot(f_bonds_ref[...], w_i_ref[...])          # (NB_PAD, 2*HIDDEN)
    h = jax.nn.relu(h_in)

    # depth-1 directed message-passing steps:
    #   m_b = sum_{b': dst(b') == src(b), b' != rev(b)} h_{b'}   (dense A_b2b)
    #   h   = ReLU(W_i(f_bonds) + m @ W_h)            (pre-activation residual)
    for _ in range(DEPTH - 1):
        m = dot(a_b2b_ref[...], h)
        h = jax.nn.relu(h_in + dot(m, w_h_ref[...]))

    # atom aggregation + W_o:  ReLU(f_atoms @ W_oa + a_msg @ W_om + b_o)
    # (split of chemprop's W_o(cat([f_atoms, a_message])) — no concat scratch)
    a_msg = dot(a_a2b_ref[...], h)                      # (NUM_ATOMS, 2*HIDDEN)
    atom_h = jax.nn.relu(dot(f_atoms_ref[...], w_oa_ref[...])
                         + dot(a_msg, w_om_ref[...])
                         + b_o_ref[...])

    # mean readout per molecule (m_scope rows sum to 1 over that mol's atoms)
    mol_vecs = dot(m_scope_ref[...], atom_h)            # (NUM_MOLS, 2*HIDDEN)

    # header: nn.Linear(hidden_size, ffn_hidden_size), lane-dense (2, 128) out
    out_ref[...] = dot(mol_vecs, w_head_ref[...]) + b_head_ref[...]


def pretrain_forward_impl(f_atoms_cat, f_bonds_cat, a_b2b, a_a2b, m_scope,
                          fused_params):
    """PretrainModel.forward: both views in one grid-less pallas_call."""
    n_inputs = 12
    out = pl.pallas_call(
        mpn_header_kernel,
        out_shape=jax.ShapeDtypeStruct((NUM_MOLS, NUM_VIEWS * FFN_HIDDEN),
                                       jnp.float32),
        # Grid-less call: every operand is a full-extent block resident in VMEM.
        in_specs=[pl.BlockSpec(memory_space=pltpu.MemorySpace.VMEM)
                  for _ in range(n_inputs)],
        out_specs=pl.BlockSpec(memory_space=pltpu.MemorySpace.VMEM),
    )(f_atoms_cat, f_bonds_cat, a_b2b, a_a2b, m_scope,
      fused_params["w_i2"], fused_params["w_h2"],
      fused_params["w_oa2"], fused_params["w_om2"], fused_params["b_o2"],
      fused_params["w_head2"], fused_params["b_head2"])

    zis = out[:, :FFN_HIDDEN]
    zjs = out[:, FFN_HIDDEN:]
    # TODO(synk): RegularizationAccumulator accumulates nothing in this
    # synthetic setup, so get_sum() is the zero scalar.
    lc_reg = jnp.float32(0.0)
    return zis, zjs, lc_reg


pretrain_forward = jax.jit(pretrain_forward_impl)


# --------------------------- synthetic data ----------------------------------
def build_topology():
    """Chain molecules; dense incidence matrices, bond axis padded to NB_PAD."""
    src_list, dst_list, rev_list = [], [], []
    for m in range(NUM_MOLS):
        base = m * ATOMS_PER_MOL
        for e in range(ATOMS_PER_MOL - 1):
            u, v = base + e, base + e + 1
            b = len(src_list)
            src_list += [u, v]
            dst_list += [v, u]
            rev_list += [b + 1, b]
    src = jnp.array(src_list, dtype=jnp.int32)
    dst = jnp.array(dst_list, dtype=jnp.int32)
    rev = jnp.array(rev_list, dtype=jnp.int32)

    atoms = jnp.arange(NUM_ATOMS, dtype=jnp.int32)
    bonds = jnp.arange(NUM_BONDS, dtype=jnp.int32)

    # A_a2b[a, b] = 1 if bond b points into atom a
    a_a2b = (dst[None, :] == atoms[:, None]).astype(jnp.float32)
    # A_b2b[b, b'] = 1 if dst(b') == src(b) and b' != rev(b)   (D-MPNN rule)
    a_b2b = ((dst[None, :] == src[:, None])
             & (bonds[None, :] != rev[:, None])).astype(jnp.float32)

    # pad 28 -> 32; padded rows/cols stay exactly zero (no message leakage)
    a_b2b = jnp.pad(a_b2b, ((0, NB_PAD - NUM_BONDS), (0, NB_PAD - NUM_BONDS)))
    a_a2b = jnp.pad(a_a2b, ((0, 0), (0, NB_PAD - NUM_BONDS)))

    # mean readout scope (only real atoms, fixed 1/ATOMS_PER_MOL normalization)
    mol_of_atom = atoms // ATOMS_PER_MOL
    m_scope = (mol_of_atom[None, :] == jnp.arange(NUM_MOLS)[:, None])
    m_scope = m_scope.astype(jnp.float32) / float(ATOMS_PER_MOL)
    return a_b2b, a_a2b, m_scope


def build_views(key, base_atoms, base_bonds):
    """Two contrastive augmentations (feature dropout), stacked on the lane axis."""
    def one_view(k):
        ka, kb = jax.random.split(k)
        am = jax.random.bernoulli(ka, 0.85, base_atoms.shape).astype(jnp.float32)
        bm = jax.random.bernoulli(kb, 0.85, base_bonds.shape).astype(jnp.float32)
        return base_atoms * am, base_bonds * bm

    ki, kj = jax.random.split(key)
    fa_i, fb_i = one_view(ki)
    fa_j, fb_j = one_view(kj)

    # sublane-pad bonds 28 -> 32 (zero rows), then stack views on the lane axis
    fb_i = jnp.pad(fb_i, ((0, NB_PAD - NUM_BONDS), (0, 0)))
    fb_j = jnp.pad(fb_j, ((0, NB_PAD - NUM_BONDS), (0, 0)))
    f_atoms_cat = jnp.concatenate([fa_i, fa_j], axis=1)   # (NUM_ATOMS, 2*ATOM_FDIM)
    f_bonds_cat = jnp.concatenate([fb_i, fb_j], axis=1)   # (NB_PAD, 2*BOND_FDIM)
    return f_atoms_cat, f_bonds_cat


def xavier(key, shape):
    fan_in, fan_out = shape
    std = (2.0 / (fan_in + fan_out)) ** 0.5
    return std * jax.random.normal(key, shape, dtype=jnp.float32)


def init_params(key):
    """Per-view (shared) encoder + header parameters, chemprop-style."""
    ks = jax.random.split(key, 5)
    return {
        "w_i":    xavier(ks[0], (BOND_FDIM, HIDDEN)),    # W_i (bias=False)
        "w_h":    xavier(ks[1], (HIDDEN, HIDDEN)),       # W_h (bias=False)
        "w_oa":   xavier(ks[2], (ATOM_FDIM, HIDDEN)),    # W_o rows for f_atoms
        "w_om":   xavier(ks[3], (HIDDEN, HIDDEN)),       # W_o rows for a_message
        "b_o":    jnp.zeros((1, HIDDEN), dtype=jnp.float32),
        "w_head": xavier(ks[4], (HIDDEN, FFN_HIDDEN)),   # header Linear
        "b_head": jnp.zeros((1, FFN_HIDDEN), dtype=jnp.float32),
    }


def blkdiag2(w):
    z = jnp.zeros_like(w)
    return jnp.block([[w, z], [z, w]])


def fuse_view_params(p):
    """Host-built block_diag(W, W) so one matmul processes both views.

    The same encoder/header weights are used for both views (as in
    PretrainModel, where the same self.encoder / self.header run twice).
    """
    return {
        "w_i2":    blkdiag2(p["w_i"]),        # (2*BOND_FDIM, 2*HIDDEN)
        "w_h2":    blkdiag2(p["w_h"]),        # (2*HIDDEN,   2*HIDDEN)
        "w_oa2":   blkdiag2(p["w_oa"]),       # (2*ATOM_FDIM,2*HIDDEN)
        "w_om2":   blkdiag2(p["w_om"]),       # (2*HIDDEN,   2*HIDDEN)
        "b_o2":    jnp.concatenate([p["b_o"], p["b_o"]], axis=1),
        "w_head2": blkdiag2(p["w_head"]),     # (2*HIDDEN,   2*FFN_HIDDEN)
        "b_head2": jnp.concatenate([p["b_head"], p["b_head"]], axis=1),
    }


# --------------------------------- main --------------------------------------
if __name__ == "__main__":
    key = jax.random.PRNGKey(0)
    k_feat_a, k_feat_b, k_view, k_param = jax.random.split(key, 4)

    a_b2b, a_a2b, m_scope = build_topology()
    base_atoms = jax.random.normal(k_feat_a, (NUM_ATOMS, ATOM_FDIM),
                                   dtype=jnp.float32)
    base_bonds = jax.random.normal(k_feat_b, (NUM_BONDS, BOND_FDIM),
                                   dtype=jnp.float32)

    f_atoms_cat, f_bonds_cat = build_views(k_view, base_atoms, base_bonds)
    params = fuse_view_params(init_params(k_param))

    zis, zjs, lc_reg = pretrain_forward(f_atoms_cat, f_bonds_cat,
                                        a_b2b, a_a2b, m_scope, params)
    jax.block_until_ready((zis, zjs, lc_reg))

    assert zis.shape == (NUM_MOLS, FFN_HIDDEN)
    assert zjs.shape == (NUM_MOLS, FFN_HIDDEN)
    assert jnp.isfinite(zis).all() and jnp.isfinite(zjs).all()
    assert float(lc_reg) == 0.0
    print("KERNEL_OK")
</pallas_src>

<mosaic_0001>
module attributes {stable_mosaic.version = 11 : i64} {
  func.func @mpn_header_kernel(%arg0: memref<16x16xf32, #tpu.memory_space<vmem>>, %arg1: memref<32x32xf32, #tpu.memory_space<vmem>>, %arg2: memref<32x32xf32, #tpu.memory_space<vmem>>, %arg3: memref<16x32xf32, #tpu.memory_space<vmem>>, %arg4: memref<2x16xf32, #tpu.memory_space<vmem>>, %arg5: memref<32x64xf32, #tpu.memory_space<vmem>>, %arg6: memref<64x64xf32, #tpu.memory_space<vmem>>, %arg7: memref<16x64xf32, #tpu.memory_space<vmem>>, %arg8: memref<64x64xf32, #tpu.memory_space<vmem>>, %arg9: memref<1x64xf32, #tpu.memory_space<vmem>>, %arg10: memref<64x128xf32, #tpu.memory_space<vmem>>, %arg11: memref<1x128xf32, #tpu.memory_space<vmem>>, %arg12: memref<2x128xf32, #tpu.memory_space<vmem>>) attributes {dimension_semantics = [], scalar_prefetch = 0 : i64, scratch_operands = 0 : i64, tpu.core_type = #tpu.core_type<tc>} {
    %c0 = arith.constant 0 : index
    %c0_0 = arith.constant 0 : index
    %0 = vector.load %arg1[%c0, %c0_0] : memref<32x32xf32, #tpu.memory_space<vmem>>, vector<32x32xf32>
    %c0_1 = arith.constant 0 : index
    %c0_2 = arith.constant 0 : index
    %1 = vector.load %arg5[%c0_1, %c0_2] : memref<32x64xf32, #tpu.memory_space<vmem>>, vector<32x64xf32>
    %cst = arith.constant dense<0.000000e+00> : vector<32x64xf32>
    %2 = tpu.matmul %0, %1, %cst {dimension_numbers = #tpu.dot_dimension_numbers<[1], [0], [0], [1], [0, 0, 1, 1], [], []>} : vector<32x32xf32>, vector<32x64xf32>, vector<32x64xf32> -> vector<32x64xf32>
    %cst_3 = arith.constant 0.000000e+00 : f32
    %3 = vector.broadcast %cst_3 : f32 to vector<32x64xf32>
    %4 = arith.maximumf %2, %3 : vector<32x64xf32>
    %c0_4 = arith.constant 0 : index
    %c0_5 = arith.constant 0 : index
    %5 = vector.load %arg2[%c0_4, %c0_5] : memref<32x32xf32, #tpu.memory_space<vmem>>, vector<32x32xf32>
    %cst_6 = arith.constant dense<0.000000e+00> : vector<32x64xf32>
    %6 = tpu.matmul %5, %4, %cst_6 {dimension_numbers = #tpu.dot_dimension_numbers<[1], [0], [0], [1], [0, 0, 1, 1], [], []>} : vector<32x32xf32>, vector<32x64xf32>, vector<32x64xf32> -> vector<32x64xf32>
    %c0_7 = arith.constant 0 : index
    %c0_8 = arith.constant 0 : index
    %7 = vector.load %arg6[%c0_7, %c0_8] : memref<64x64xf32, #tpu.memory_space<vmem>>, vector<64x64xf32>
    %cst_9 = arith.constant dense<0.000000e+00> : vector<32x64xf32>
    %8 = tpu.matmul %6, %7, %cst_9 {dimension_numbers = #tpu.dot_dimension_numbers<[1], [0], [0], [1], [0, 0, 1, 1], [], []>} : vector<32x64xf32>, vector<64x64xf32>, vector<32x64xf32> -> vector<32x64xf32>
    %9 = arith.addf %2, %8 : vector<32x64xf32>
    %cst_10 = arith.constant 0.000000e+00 : f32
    %10 = vector.broadcast %cst_10 : f32 to vector<32x64xf32>
    %11 = arith.maximumf %9, %10 : vector<32x64xf32>
    %c0_11 = arith.constant 0 : index
    %c0_12 = arith.constant 0 : index
    %12 = vector.load %arg2[%c0_11, %c0_12] : memref<32x32xf32, #tpu.memory_space<vmem>>, vector<32x32xf32>
    %cst_13 = arith.constant dense<0.000000e+00> : vector<32x64xf32>
    %13 = tpu.matmul %12, %11, %cst_13 {dimension_numbers = #tpu.dot_dimension_numbers<[1], [0], [0], [1], [0, 0, 1, 1], [], []>} : vector<32x32xf32>, vector<32x64xf32>, vector<32x64xf32> -> vector<32x64xf32>
    %c0_14 = arith.constant 0 : index
    %c0_15 = arith.constant 0 : index
    %14 = vector.load %arg6[%c0_14, %c0_15] : memref<64x64xf32, #tpu.memory_space<vmem>>, vector<64x64xf32>
    %cst_16 = arith.constant dense<0.000000e+00> : vector<32x64xf32>
    %15 = tpu.matmul %13, %14, %cst_16 {dimension_numbers = #tpu.dot_dimension_numbers<[1], [0], [0], [1], [0, 0, 1, 1], [], []>} : vector<32x64xf32>, vector<64x64xf32>, vector<32x64xf32> -> vector<32x64xf32>
    %16 = arith.addf %2, %15 : vector<32x64xf32>
    %cst_17 = arith.constant 0.000000e+00 : f32
    %17 = vector.broadcast %cst_17 : f32 to vector<32x64xf32>
    %18 = arith.maximumf %16, %17 : vector<32x64xf32>
    %c0_18 = arith.constant 0 : index
    %c0_19 = arith.constant 0 : index
    %19 = vector.load %arg3[%c0_18, %c0_19] : memref<16x32xf32, #tpu.memory_space<vmem>>, vector<16x32xf32>
    %cst_20 = arith.constant dense<0.000000e+00> : vector<16x64xf32>
    %20 = tpu.matmul %19, %18, %cst_20 {dimension_numbers = #tpu.dot_dimension_numbers<[1], [0], [0], [1], [0, 0, 1, 1], [], []>} : vector<16x32xf32>, vector<32x64xf32>, vector<16x64xf32> -> vector<16x64xf32>
    %c0_21 = arith.constant 0 : index
    %c0_22 = arith.constant 0 : index
    %21 = vector.load %arg0[%c0_21, %c0_22] : memref<16x16xf32, #tpu.memory_space<vmem>>, vector<16x16xf32>
    %c0_23 = arith.constant 0 : index
    %c0_24 = arith.constant 0 : index
    %22 = vector.load %arg7[%c0_23, %c0_24] : memref<16x64xf32, #tpu.memory_space<vmem>>, vector<16x64xf32>
    %cst_25 = arith.constant dense<0.000000e+00> : vector<16x64xf32>
    %23 = tpu.matmul %21, %22, %cst_25 {dimension_numbers = #tpu.dot_dimension_numbers<[1], [0], [0], [1], [0, 0, 1, 1], [], []>} : vector<16x16xf32>, vector<16x64xf32>, vector<16x64xf32> -> vector<16x64xf32>
    %c0_26 = arith.constant 0 : index
    %c0_27 = arith.constant 0 : index
    %24 = vector.load %arg8[%c0_26, %c0_27] : memref<64x64xf32, #tpu.memory_space<vmem>>, vector<64x64xf32>
    %cst_28 = arith.constant dense<0.000000e+00> : vector<16x64xf32>
    %25 = tpu.matmul %20, %24, %cst_28 {dimension_numbers = #tpu.dot_dimension_numbers<[1], [0], [0], [1], [0, 0, 1, 1], [], []>} : vector<16x64xf32>, vector<64x64xf32>, vector<16x64xf32> -> vector<16x64xf32>
    %26 = arith.addf %23, %25 : vector<16x64xf32>
    %c0_29 = arith.constant 0 : index
    %c0_30 = arith.constant 0 : index
    %27 = vector.load %arg9[%c0_29, %c0_30] : memref<1x64xf32, #tpu.memory_space<vmem>>, vector<1x64xf32>
    %28 = vector.broadcast %27 : vector<1x64xf32> to vector<16x64xf32>
    %29 = arith.addf %26, %28 : vector<16x64xf32>
    %cst_31 = arith.constant 0.000000e+00 : f32
    %30 = vector.broadcast %cst_31 : f32 to vector<16x64xf32>
    %31 = arith.maximumf %29, %30 : vector<16x64xf32>
    %c0_32 = arith.constant 0 : index
    %c0_33 = arith.constant 0 : index
    %32 = vector.load %arg4[%c0_32, %c0_33] : memref<2x16xf32, #tpu.memory_space<vmem>>, vector<2x16xf32>
    %cst_34 = arith.constant dense<0.000000e+00> : vector<2x64xf32>
    %33 = tpu.matmul %32, %31, %cst_34 {dimension_numbers = #tpu.dot_dimension_numbers<[1], [0], [0], [1], [0, 0, 1, 1], [], []>} : vector<2x16xf32>, vector<16x64xf32>, vector<2x64xf32> -> vector<2x64xf32>
    %c0_35 = arith.constant 0 : index
    %c0_36 = arith.constant 0 : index
    %34 = vector.load %arg10[%c0_35, %c0_36] : memref<64x128xf32, #tpu.memory_space<vmem>>, vector<64x128xf32>
    %cst_37 = arith.constant dense<0.000000e+00> : vector<2x128xf32>
    %35 = tpu.matmul %33, %34, %cst_37 {dimension_numbers = #tpu.dot_dimension_numbers<[1], [0], [0], [1], [0, 0, 1, 1], [], []>} : vector<2x64xf32>, vector<64x128xf32>, vector<2x128xf32> -> vector<2x128xf32>
    %c0_38 = arith.constant 0 : index
    %c0_39 = arith.constant 0 : index
    %36 = vector.load %arg11[%c0_38, %c0_39] : memref<1x128xf32, #tpu.memory_space<vmem>>, vector<1x128xf32>
    %37 = vector.broadcast %36 : vector<1x128xf32> to vector<2x128xf32>
    %38 = arith.addf %35, %37 : vector<2x128xf32>
    %c0_40 = arith.constant 0 : index
    %c0_41 = arith.constant 0 : index
    %39 = vector.load %arg12[%c0_40, %c0_41] : memref<2x128xf32, #tpu.memory_space<vmem>>, vector<2x128xf32>
    tpu.vector_store %arg12[%c0_40, %c0_41], %38 {strides = array<i32>} : memref<2x128xf32, #tpu.memory_space<vmem>>, vector<2x128xf32>,
    return
  }
}

</mosaic_0001>

<bundles_post_ra>
// kernel: pretrain_forward_impl.1
= control target key start
LH: loop header
LB: loop body
LE: loop exit
PB: predicated region body
PF: predicated region fallthrough
CT: control target
= control target key end

     0   :  { %17 = vsyncpa [#allocation3], 0  ;;  %s1849_s0 = inlined_call_operand.vmem [shape: f32[16,16], index: 0, kind: input, shape index: {}]   ;;  %s1850_s1 = inlined_call_operand.hbm [shape: f32[32,32], index: 1, kind: input, shape index: {}]   ;;  %s1851_s2 = inlined_call_operand.hbm [shape: f32[32,32], index: 2, kind: input, shape index: {}]   ;;  %s1852_s3 = inlined_call_operand.hbm [shape: f32[16,32], index: 3, kind: input, shape index: {}]   ;;  %s1853_s4 = inlined_call_operand.hbm [shape: f32[2,16], index: 4, kind: input, shape index: {}]   ;;  %s1854_s5 = inlined_call_operand.hbm [shape: f32[32,64], index: 5, kind: input, shape index: {}]   ;;  %s1855_s6 = inlined_call_operand.hbm [shape: f32[64,64], index: 6, kind: input, shape index: {}]   ;;  %s1856_s7 = inlined_call_operand.hbm [shape: f32[16,64], index: 7, kind: input, shape index: {}]   ;;  %s1857_s8 = inlined_call_operand.hbm [shape: f32[64,64], index: 8, kind: input, shape index: {}]   ;;  %s1858_s9 = inlined_call_operand.hbm [shape: f32[1,64], index: 9, kind: input, shape index: {}]   ;;  %s1859_s10 = inlined_call_operand.hbm [shape: f32[64,128], index: 10, kind: input, shape index: {}]   ;;  %s1860_s11 = inlined_call_operand.hbm [shape: f32[1,128], index: 11, kind: input, shape index: {}]   ;;  %s1861_s12 = inlined_call_operand.vmem [shape: f32[2,128], index: 12, kind: output, shape index: {}]  }
   0x1   :  { %18 = vsyncpa [#allocation5], 0 }
   0x2   :  { %19 = vsyncpa [#allocation8], 0 }
   0x3   :  { %20 = vsyncpa [#allocation11], 0 }
   0x4   :  { %21 = vsyncpa [#allocation14], 0 }
   0x5   :  { %22 = vsyncpa [#allocation17], 0  ;;  %s1647_s21 = smov [#allocation4]   ;;  %s1648_s23 = smov [#allocation7]  }
   0x6   :  { %s42_s22 = sshll.u32 %s1647_s21, 4  ;;  %s67_s24 = sshll.u32 %s1648_s23, 4  ;;  %s43_s22 = int_to_ptr.vmem [resolvable:$true] %s42_s22  ;;  %s68_s24 = int_to_ptr.vmem [resolvable:$true] %s67_s24 }
   0x7   :  { %s1423_s25 = scalar_lea.vmem %s43_s22, 512  ;;  %p1428_p1 = scmp.lt.s32.totalorder %s43_s22, %s43_s22 }
   0x8   :  { %p1424_p0 = scmp.ne.s32.totalorder %s43_s22, %s1423_s25  ;;  %p1429_p2 = scmp.lt.s32.totalorder %s1423_s25, %s1423_s25 }
   0xa   :  { %p1430_p3 = por %p1429_p2, %p1428_p1 }
   0xc   :  { %p1431_p4 = pnand %p1430_p3, %p1424_p0 }
   0xe   :  { %1434 = shalt.err (!%p1431_p4)
}
   0xf   :  { %s1649_s26 = smov 128   ;;  %s1650_s27 = smov 8  }
  0x10   :  { %48 = dma.hbm_to_vmem [thread:$0]  %s1851_s2, 512, %s43_s22, [#allocation5], %s1649_s26, %s1649_s26, %s1650_s27  }
  0x11   :  { %s1443_s30 = scalar_lea.vmem %s68_s24, 32  ;;  %p1448_p6 = scmp.lt.s32.totalorder %s68_s24, %s68_s24 }
  0x12   :  { %p1444_p5 = scmp.ne.s32.totalorder %s68_s24, %s1443_s30  ;;  %p1449_p7 = scmp.lt.s32.totalorder %s1443_s30, %s1443_s30 }
  0x14   :  { %p1450_p8 = por %p1449_p7, %p1448_p6 }
  0x16   :  { %p1451_p9 = pnand %p1450_p8, %p1444_p5 }
  0x18   :  { %1454 = shalt.err (!%p1451_p9)
}
  0x19   :  { %70 = dma.hbm_to_vmem [thread:$0]  %s1853_s4, 32, %s68_s24, [#allocation8]  }
  0x1a   :  { %s1651_s15 = smov [#allocation10]   ;;  %s1652_s17 = smov [#allocation13]  }
  0x1b   :  { %s88_s16 = sshll.u32 %s1651_s15, 4  ;;  %s112_s18 = sshll.u32 %s1652_s17, 4  ;;  %s89_s16 = int_to_ptr.vmem [resolvable:$true] %s88_s16  ;;  %s113_s18 = int_to_ptr.vmem [resolvable:$true] %s112_s18 }
  0x1c   :  { %s1463_s19 = scalar_lea.vmem %s89_s16, 1024  ;;  %p1468_p11 = scmp.lt.s32.totalorder %s89_s16, %s89_s16 }
  0x1d   :  { %p1464_p10 = scmp.ne.s32.totalorder %s89_s16, %s1463_s19  ;;  %p1469_p12 = scmp.lt.s32.totalorder %s1463_s19, %s1463_s19 }
  0x1f   :  { %p1470_p13 = por %p1469_p12, %p1468_p11 }
  0x21   :  { %p1471_p0 = pnand %p1470_p13, %p1464_p10 }
  0x23   :  { %1474 = shalt.err (!%p1471_p0)
}
  0x24   :  { %94 = dma.hbm_to_vmem [thread:$0]  %s1855_s6, 1024, %s89_s16, [#allocation11], %s1649_s26, %s1649_s26, %s1650_s27  }
  0x25   :  { %s1483_s4 = scalar_lea.vmem %s113_s18, 1024  ;;  %p1488_p2 = scmp.lt.s32.totalorder %s113_s18, %s113_s18 }
  0x26   :  { %p1484_p1 = scmp.ne.s32.totalorder %s113_s18, %s1483_s4  ;;  %p1489_p3 = scmp.lt.s32.totalorder %s1483_s4, %s1483_s4 }
  0x28   :  { %p1490_p4 = por %p1489_p3, %p1488_p2 }
  0x2a   :  { %p1491_p5 = pnand %p1490_p4, %p1484_p1 }
  0x2c   :  { %1494 = shalt.err (!%p1491_p5)
}
  0x2d   :  { %118 = dma.hbm_to_vmem [thread:$0]  %s1857_s8, 1024, %s113_s18, [#allocation14], %s1649_s26, %s1649_s26, %s1650_s27  }
  0x2e   :  { %s1653_s23 = smov [#allocation16]   ;;  %s1654_s25 = smov [#allocation2]  }
  0x2f   :  { %s134_s24 = sshll.u32 %s1653_s23, 4  ;;  %s30_s28 = sshll.u32 %s1654_s25, 4  ;;  %s135_s24 = int_to_ptr.vmem [resolvable:$true] %s134_s24  ;;  %s31_s28 = int_to_ptr.vmem [resolvable:$true] %s30_s28 }
  0x30   :  { %s1503_s6 = scalar_lea.vmem %s135_s24, 1024  ;;  %p1508_p7 = scmp.lt.s32.totalorder %s135_s24, %s135_s24 }
  0x31   :  { %p1504_p6 = scmp.ne.s32.totalorder %s135_s24, %s1503_s6  ;;  %p1509_p8 = scmp.lt.s32.totalorder %s1503_s6, %s1503_s6 }
  0x33   :  { %p1510_p9 = por %p1509_p8, %p1508_p7 }
  0x35   :  { %p1511_p10 = pnand %p1510_p9, %p1504_p6 }
  0x37   :  { %1514 = shalt.err (!%p1511_p10)
}
  0x38   :  { %140 = dma.hbm_to_vmem [thread:$0]  %s1859_s10, 1024, %s135_s24, [#allocation17], %s1649_s26, %s1649_s26, %s1650_s27  }
  0x39   :  { %s1523_s8 = scalar_lea.vmem %s31_s28, 512  ;;  %p1528_p12 = scmp.lt.s32.totalorder %s31_s28, %s31_s28 }
  0x3a   :  { %p1524_p11 = scmp.ne.s32.totalorder %s31_s28, %s1523_s8  ;;  %p1529_p13 = scmp.lt.s32.totalorder %s1523_s8, %s1523_s8 }
  0x3c   :  { %p1530_p0 = por %p1529_p13, %p1528_p12 }
  0x3e   :  { %p1531_p1 = pnand %p1530_p0, %p1524_p11 }
  0x40   :  { %1534 = shalt.err (!%p1531_p1)
}
  0x41   :  { %36 = dma.hbm_to_vmem [thread:$0]  %s1850_s1, 512, %s31_s28, [#allocation3], %s1649_s26, %s1649_s26, %s1650_s27  }
  0x42   :  { %s1655_s15 = smov [#allocation6]   ;;  %s1656_s17 = smov [#allocation9]  }
  0x43   :  { %s54_s16 = sshll.u32 %s1655_s15, 4  ;;  %s76_s18 = sshll.u32 %s1656_s17, 4  ;;  %s55_s16 = int_to_ptr.vmem [resolvable:$true] %s54_s16  ;;  %s77_s18 = int_to_ptr.vmem [resolvable:$true] %s76_s18 }
  0x44   :  { %s1543_s10 = scalar_lea.vmem %s55_s16, 256  ;;  %p1548_p3 = scmp.lt.s32.totalorder %s55_s16, %s55_s16 }
  0x45   :  { %p1544_p2 = scmp.ne.s32.totalorder %s55_s16, %s1543_s10  ;;  %p1549_p4 = scmp.lt.s32.totalorder %s1543_s10, %s1543_s10 }
  0x47   :  { %p1550_p5 = por %p1549_p4, %p1548_p3 }
  0x49   :  { %p1551_p6 = pnand %p1550_p5, %p1544_p2 }
  0x4b   :  { %1554 = shalt.err (!%p1551_p6)
}
  0x4c   :  { %60 = dma.hbm_to_vmem [thread:$0]  %s1852_s3, 256, %s55_s16, [#allocation5], %s1649_s26, %s1649_s26, %s1650_s27  }
  0x4d   :  { %s1563_s1 = scalar_lea.vmem %s77_s18, 512  ;;  %p1568_p8 = scmp.lt.s32.totalorder %s77_s18, %s77_s18 }
  0x4e   :  { %p1564_p7 = scmp.ne.s32.totalorder %s77_s18, %s1563_s1  ;;  %p1569_p9 = scmp.lt.s32.totalorder %s1563_s1, %s1563_s1 }
  0x50   :  { %p1570_p10 = por %p1569_p9, %p1568_p8 }
  0x52   :  { %p1571_p11 = pnand %p1570_p10, %p1564_p7 }
  0x54   :  { %1574 = shalt.err (!%p1571_p11)
}
  0x55   :  { %82 = dma.hbm_to_vmem [thread:$0]  %s1854_s5, 512, %s77_s18, [#allocation8], %s1649_s26, %s1649_s26, %s1650_s27  }
  0x56   :  { %s1657_s21 = smov [#allocation12]   ;;  %s1658_s23 = smov [#allocation15]  }
  0x57   :  { %s100_s22 = sshll.u32 %s1657_s21, 4  ;;  %s125_s24 = sshll.u32 %s1658_s23, 4  ;;  %s101_s22 = int_to_ptr.vmem [resolvable:$true] %s100_s22  ;;  %s126_s24 = int_to_ptr.vmem [resolvable:$true] %s125_s24 }
  0x58   :  { %s1583_s3 = scalar_lea.vmem %s101_s22, 256  ;;  %p1588_p13 = scmp.lt.s32.totalorder %s101_s22, %s101_s22 }
  0x59   :  { %p1584_p12 = scmp.ne.s32.totalorder %s101_s22, %s1583_s3  ;;  %p1589_p0 = scmp.lt.s32.totalorder %s1583_s3, %s1583_s3 }
  0x5b   :  { %p1590_p1 = por %p1589_p0, %p1588_p13 }
  0x5d   :  { %p1591_p2 = pnand %p1590_p1, %p1584_p12 }
  0x5f   :  { %1594 = shalt.err (!%p1591_p2)
}
  0x60   :  { %106 = dma.hbm_to_vmem [thread:$0]  %s1856_s7, 256, %s101_s22, [#allocation11], %s1649_s26, %s1649_s26, %s1650_s27  }
  0x61   :  { %s1603_s5 = scalar_lea.vmem %s126_s24, 16  ;;  %s1607_s6 = scalar_lea.vmem %s126_s24, 32 }
  0x62   :  { %p1604_p3 = scmp.ne.s32.totalorder %s126_s24, %s1603_s5  ;;  %p1608_p4 = scmp.lt.s32.totalorder %s126_s24, %s126_s24 }
  0x63   :  { %p1609_p5 = scmp.lt.s32.totalorder %s1607_s6, %s1603_s5 }
  0x65   :  { %p1610_p6 = por %p1609_p5, %p1608_p4 }
  0x67   :  { %p1611_p7 = pnand %p1610_p6, %p1604_p3 }
  0x69   :  { %1614 = shalt.err (!%p1611_p7)
}
  0x6a   :  { %128 = dma.hbm_to_vmem [thread:$0]  %s1858_s9, 16, %s126_s24, [#allocation14]  }
  0x6b   :  { %s1659_s8 = smov [#allocation18]  }
  0x6c   :  { %s147_s13 = sshll.u32 %s1659_s8, 4  ;;  %s148_s13 = int_to_ptr.vmem [resolvable:$true] %s147_s13 }
  0x6d   :  { %s1623_s14 = scalar_lea.vmem %s148_s13, 16  ;;  %s1627_s15 = scalar_lea.vmem %s148_s13, 32 }
  0x6e   :  { %p1624_p8 = scmp.ne.s32.totalorder %s148_s13, %s1623_s14  ;;  %p1628_p9 = scmp.lt.s32.totalorder %s148_s13, %s148_s13 }
  0x6f   :  { %p1629_p10 = scmp.lt.s32.totalorder %s1627_s15, %s1623_s14 }
  0x71   :  { %p1630_p11 = por %p1629_p10, %p1628_p9 }
  0x73   :  { %p1631_p12 = pnand %p1630_p11, %p1624_p8 }
  0x75   :  { %1634 = shalt.err (!%p1631_p12)
}
  0x76   :  { %150 = dma.hbm_to_vmem [thread:$0]  %s1860_s11, 16, %s148_s13, [#allocation17]  }
  0x77   :  { %1635 = dma.done.wait [#allocation3], 512  }
  0x78   :  { %1636 = vsyncadd [#allocation3], 4294966784 }
  0x79   :  { %1637 = dma.done.wait [#allocation5], 768  }
  0x7a   :  { %1638 = vsyncadd [#allocation5], 4294966528 }
  0x7b   :  { %1639 = dma.done.wait [#allocation8], 544  }
  0x7c   :  { %1640 = vsyncadd [#allocation8], 4294966752 }
  0x7d   :  { %1641 = dma.done.wait [#allocation11], 1280  }
  0x7e   :  { %1642 = vsyncadd [#allocation11], 4294966016 }
  0x7f   :  { %1643 = dma.done.wait [#allocation14], 1040  }
  0x80   :  { %1644 = vsyncadd [#allocation14], 4294966256 }
  0x81   :  { %1645 = dma.done.wait [#allocation17], 1040  }
  0x82   :  { %1646 = vsyncadd [#allocation17], 4294966256  ;;  %vm192_vm0 = vcmask 261120   ;;  %v191_v0 = vld [vmem:[#allocation9 + $0x18] sm:$0xff]  ;;  %v190_v1 = vld [vmem:[#allocation9 + $0x10] sm:$0xff]  ;;  %vm403_vm1 = vcmask 523264  }
  0x83   :  { %1251 = vmatprep.subr.mxu0 %v191_v0  ;;  %v184_v2 = vld [vmem:[#allocation2] sm:$0xff]  ;;  %v188_v4 = vld [vmem:[#allocation9] sm:$0xff]  ;;  %v185_v5 = vld [vmem:[#allocation2 + $0x8] sm:$0xff]  ;;  %vm875_vm2 = vcmask 130048   ;;  %vm1661_vm3 = vmmov 0  }
  0x84   :  { %1252 = vmatpush3.msra.mxu0 %v191_v0  ;;  %v189_v3 = vld [vmem:[#allocation9 + $0x8] sm:$0xff]  ;;  %1259 = vmatprep.mubr.msk.f32.mxu0 %vm192_vm0, %v184_v2  ;;  %v186_v6 = vld [vmem:[#allocation2 + $0x10] sm:$0xff]  ;;  %v295_v17 = vld [vmem:[#allocation4 + $0x8] sm:$0xff] }
  0x85   :  { %1253 = vmatprep.subr.mxu0 %v190_v1  ;;  %v187_v7 = vld [vmem:[#allocation2 + $0x18] sm:$0xff]  ;;  %v294_v8 = vld [vmem:[#allocation4] sm:$0xff]  ;;  %v1802_v18 = vld [vmem:[#allocation10 + $0x38] sm:$0xff] }
  0x86   :  { %1254 = vmatpush3.msra.mxu0 %v190_v1  ;;  %1309 = vmatprep.mubr.msk.f32.mxu1 %vm192_vm0, %v294_v8  ;;  %v296_v19 = vld [vmem:[#allocation4 + $0x10] sm:$0xff]  ;;  %v401_v20 = vld [vmem:[#allocation10 + $0x30] sm:$0xff]  ;;  %v297_v21 = vld [vmem:[#allocation4 + $0x18] sm:$0xff] }
  0x87   :  { %1255 = vmatprep.subr.mxu0 %v189_v3  ;;  %v400_v22 = vld [vmem:[#allocation10 + $0x28] sm:$0xff]  ;;  %v399_v23 = vld [vmem:[#allocation10 + $0x20] sm:$0xff]  ;;  %v398_v24 = vld [vmem:[#allocation10 + $0x18] sm:$0xff] }
  0x88   :  { %1256 = vmatpush3.msra.mxu0 %v189_v3  ;;  %v397_v25 = vld [vmem:[#allocation10 + $0x10] sm:$0xff]  ;;  %v396_v26 = vld [vmem:[#allocation10 + $0x8] sm:$0xff]  ;;  %v395_v27 = vld [vmem:[#allocation10] sm:$0xff] }
  0x89   :  { %1257 = vmatprep.subr.mxu0 %v188_v4  ;;  %v699_v48 = vld [vmem:[#allocation6] sm:$0xff]  ;;  %v700_v62 = vld [vmem:[#allocation6 + $0x8] sm:$0xff]  ;;  %v792_v0 = vld [vmem:[#allocation13 + $0x30] sm:$0xff] }
  0x8a   :  { %1258 = vmatpush3.msra.mxu0 %v188_v4  ;;  %v785_v49 = vld [vmem:[#allocation12 + $0x8] sm:$0xff]  ;;  %v791_v1 = vld [vmem:[#allocation13 + $0x28] sm:$0xff]  ;;  %v790_v2 = vld [vmem:[#allocation13 + $0x20] sm:$0xff] }
  0x8b   :  { %1260 = vmatmul.mubr.msk.f32.vlgmr.msra.gmra.mxu0 %vm192_vm0, %v185_v5  ;;  %v793_v63 = vld [vmem:[#allocation13 + $0x38] sm:$0xff]  ;;  %v788_v4 = vld [vmem:[#allocation13 + $0x10] sm:$0xff]  ;;  %v787_v5 = vld [vmem:[#allocation13 + $0x8] sm:$0xff] }
  0x8c   :  { %1262 = vmatprep.mubr.msk.f32.mxu0 %vm192_vm0, %v186_v6  ;;  %v789_v3 = vld [vmem:[#allocation13 + $0x18] sm:$0xff]  ;;  %v784_v6 = vld [vmem:[#allocation12] sm:$0xff] }
  0x8f   :  { %1263 = vmatmul.mubr.msk.f32.gmra.mxu0 %vm192_vm0, %v187_v7  ;;  %v782_v7 = vld [vmem:[%s1849_s0] sm:$0xff] }
  0x90   :  { %1273 = vmatprep.mubr.msk.f32.mxu0 %vm192_vm0, %v294_v8  ;;  %v786_v8 = vld [vmem:[#allocation13] sm:$0xff] }
 0x14b   :  { %v1790_v9 = vpop.f32.mrf.mxu0 }
 0x14c   :  { %v291_v15 = vmax.f32 %v1790_v9, 0.0 }
 0x14d   :  { %v1792_v10 = vpop.f32.mrf.mxu0 }
 0x14e   :  { %v290_v16 = vmax.f32 %v1792_v10, 0.0 }
 0x14f   :  { %v1794_v11 = vpop.f32.mrf.mxu0 }
 0x150   :  { %v293_v12 = vmax.f32 %v1794_v11, 0.0 }
 0x151   :  { %v1797_v13 = vpop.f32.mrf.mxu0 }
 0x152   :  { %v292_v14 = vmax.f32 %v1797_v13, 0.0  ;;  %1265 = vmatprep.subr.mxu0 %v293_v12 }
 0x153   :  { %1266 = vmatpush3.msra.mxu0 %v293_v12  ;;  %v1660_v12 = vmov 0.0  }
 0x154   :  { %1267 = vmatprep.subr.mxu0 %v292_v14 }
 0x155   :  { %1268 = vmatpush3.msra.mxu0 %v292_v14 }
 0x156   :  { %1269 = vmatprep.subr.mxu0 %v291_v15 }
 0x157   :  { %1270 = vmatpush3.msra.mxu0 %v291_v15  ;;  %v1167_v15 = vld [vmem:[#allocation15] ss:$0 sm:$0xff] }
 0x158   :  { %1271 = vmatprep.subr.mxu0 %v290_v16 }
 0x159   :  { %1272 = vmatpush3.msra.mxu0 %v290_v16 }
 0x15a   :  { %1274 = vmatmul.mubr.msk.f32.vlgmr.msra.gmra.mxu0 %vm192_vm0, %v295_v17  ;;  %1279 = vmatprep.subr.mxu0 %v1802_v18 }
 0x15b   :  { %1276 = vmatprep.mubr.msk.f32.mxu0 %vm192_vm0, %v296_v19  ;;  %1280 = vmatpush3.msra.mxu0 %v1802_v18 }
 0x15c   :  { %1281 = vmatprep.subr.mxu0 %v401_v20 }
 0x15d   :  { %1282 = vmatpush3.msra.mxu0 %v401_v20 }
 0x15e   :  { %1277 = vmatmul.mubr.msk.f32.gmra.mxu0 %vm192_vm0, %v297_v21  ;;  %1283 = vmatprep.subr.mxu0 %v400_v22 }
 0x15f   :  { %1284 = vmatpush3.msra.mxu0 %v400_v22 }
 0x160   :  { %1285 = vmatprep.subr.mxu0 %v399_v23 }
 0x161   :  { %1286 = vmatpush3.msra.mxu0 %v399_v23 }
 0x162   :  { %1287 = vmatprep.subr.mxu0 %v398_v24 }
 0x163   :  { %1288 = vmatpush3.msra.mxu0 %v398_v24 }
 0x164   :  { %1289 = vmatprep.subr.mxu0 %v397_v25 }
 0x165   :  { %1290 = vmatpush3.msra.mxu0 %v397_v25 }
 0x166   :  { %1291 = vmatprep.subr.mxu0 %v396_v26 }
 0x167   :  { %1292 = vmatpush3.msra.mxu0 %v396_v26 }
 0x168   :  { %1293 = vmatprep.subr.mxu0 %v395_v27 }
 0x169   :  { %1294 = vmatpush3.msra.mxu0 %v395_v27 }
 0x21a   :  { %v1275_v28 = vpop.f32.mrf.mxu0 }
 0x21c   :  { %v376_v29 = vpop.f32.mrf.mxu0 }
 0x21d   :  { %1295 = vmatprep.mubr.msk.f32.mxu0 %vm403_vm1, %v376_v29  ;;  %v1045_v29 = vld [vmem:[#allocation16 + $0x18] sm:$0xff] }
 0x21e   :  { %v1278_v30 = vpop.f32.mrf.mxu0  ;;  %1296 = vmatmul.mubr.msk.f32.vlgmr.msra.gmra.mxu0 %vm403_vm1, %v1275_v28  ;;  %v1046_v28 = vld [vmem:[#allocation16 + $0x20] sm:$0xff] }
 0x220   :  { %v386_v31 = vpop.f32.mrf.mxu0 }
 0x221   :  { %1298 = vmatprep.mubr.msk.f32.mxu0 %vm403_vm1, %v386_v31  ;;  %v1043_v31 = vld [vmem:[#allocation16 + $0x8] sm:$0xff] }
 0x222   :  { %1299 = vmatmul.mubr.msk.f32.gmra.mxu0 %vm403_vm1, %v1278_v30  ;;  %v1044_v30 = vld [vmem:[#allocation16 + $0x10] sm:$0xff] }
 0x223   :  { %1345 = vmatprep.mubr.msk.f32.mxu0 %vm192_vm0, %v699_v48 }
 0x2de   :  { %v1297_v32 = vpop.f32.mrf.mxu0 }
 0x2df   :  { %v502_v37 = vadd.f32 %v1297_v32, %v1790_v9  ;;  %v1042_v32 = vld [vmem:[#allocation16] sm:$0xff] }
 0x2e0   :  { %v482_v33 = vpop.f32.mrf.mxu0 }
 0x2e1   :  { %v501_v40 = vadd.f32 %v482_v33, %v1792_v10  ;;  %v506_v42 = vmax.f32 %v502_v37, 0.0 }
 0x2e2   :  { %v1300_v34 = vpop.f32.mrf.mxu0 }
 0x2e3   :  { %v504_v35 = vadd.f32 %v1300_v34, %v1794_v11  ;;  %v505_v43 = vmax.f32 %v501_v40, 0.0 }
 0x2e4   :  { %v492_v36 = vpop.f32.mrf.mxu0 }
 0x2e5   :  { %v508_v38 = vmax.f32 %v504_v35, 0.0  ;;  %v503_v39 = vadd.f32 %v492_v36, %v1797_v13  ;;  %v1169_v35 = vld [vmem:[#allocation18] ss:$0 sm:$0xff] }
 0x2e7   :  { %v507_v41 = vmax.f32 %v503_v39, 0.0  ;;  %1301 = vmatprep.subr.mxu1 %v508_v38 }
 0x2e8   :  { %1302 = vmatpush3.msra.mxu1 %v508_v38 }
 0x2e9   :  { %1303 = vmatprep.subr.mxu1 %v507_v41 }
 0x2ea   :  { %1304 = vmatpush3.msra.mxu1 %v507_v41 }
 0x2eb   :  { %1305 = vmatprep.subr.mxu1 %v506_v42 }
 0x2ec   :  { %1306 = vmatpush3.msra.mxu1 %v506_v42 }
 0x2ed   :  { %1307 = vmatprep.subr.mxu1 %v505_v43 }
 0x2ee   :  { %1308 = vmatpush3.msra.mxu1 %v505_v43 }
 0x2ef   :  { %1310 = vmatmul.mubr.msk.f32.vlgmr.msra.gmra.mxu1 %vm192_vm0, %v295_v17  ;;  %1315 = vmatprep.subr.mxu1 %v1802_v18 }
 0x2f0   :  { %1312 = vmatprep.mubr.msk.f32.mxu1 %vm192_vm0, %v296_v19  ;;  %1316 = vmatpush3.msra.mxu1 %v1802_v18 }
 0x2f1   :  { %1317 = vmatprep.subr.mxu1 %v401_v20 }
 0x2f2   :  { %1318 = vmatpush3.msra.mxu1 %v401_v20 }
 0x2f3   :  { %1313 = vmatmul.mubr.msk.f32.gmra.mxu1 %vm192_vm0, %v297_v21  ;;  %1319 = vmatprep.subr.mxu1 %v400_v22 }
 0x2f4   :  { %1320 = vmatpush3.msra.mxu1 %v400_v22 }
 0x2f5   :  { %1321 = vmatprep.subr.mxu1 %v399_v23 }
 0x2f6   :  { %1322 = vmatpush3.msra.mxu1 %v399_v23 }
 0x2f7   :  { %1323 = vmatprep.subr.mxu1 %v398_v24 }
 0x2f8   :  { %1324 = vmatpush3.msra.mxu1 %v398_v24  ;;  %v968_v24 = vld [vmem:[#allocation7] sm:$0x3] }
 0x2f9   :  { %1325 = vmatprep.subr.mxu1 %v397_v25 }
 0x2fa   :  { %1326 = vmatpush3.msra.mxu1 %v397_v25  ;;  %v1049_v25 = vld [vmem:[#allocation16 + $0x38] sm:$0xff] }
 0x2fb   :  { %1327 = vmatprep.subr.mxu1 %v396_v26 }
 0x2fc   :  { %1328 = vmatpush3.msra.mxu1 %v396_v26  ;;  %v1048_v26 = vld [vmem:[#allocation16 + $0x30] sm:$0xff] }
 0x2fd   :  { %1329 = vmatprep.subr.mxu1 %v395_v27 }
 0x2fe   :  { %1330 = vmatpush3.msra.mxu1 %v395_v27  ;;  %v1047_v27 = vld [vmem:[#allocation16 + $0x28] sm:$0xff] }
 0x2ff   :  { %1367 = vmatprep.subr.mxu1 %v785_v49 }
 0x3af   :  { %v1311_v44 = vpop.f32.mrf.mxu1 }
 0x3b1   :  { %v575_v45 = vpop.f32.mrf.mxu1 }
 0x3b2   :  { %1331 = vmatprep.mubr.msk.f32.mxu1 %vm403_vm1, %v575_v45 }
 0x3b3   :  { %v1314_v46 = vpop.f32.mrf.mxu1  ;;  %1332 = vmatmul.mubr.msk.f32.vlgmr.msra.gmra.mxu1 %vm403_vm1, %v1311_v44 }
 0x3b4   :  { %1368 = vmatpush3.msra.mxu1 %v785_v49 }
 0x3b5   :  { %v585_v47 = vpop.f32.mrf.mxu1  ;;  %1369 = vmatprep.subr.mxu1 %v784_v6 }
 0x3b6   :  { %1334 = vmatprep.mubr.msk.f32.mxu1 %vm403_vm1, %v585_v47  ;;  %1370 = vmatpush3.msra.mxu1 %v784_v6 }
 0x3b7   :  { %1335 = vmatmul.mubr.msk.f32.gmra.mxu1 %vm403_vm1, %v1314_v46  ;;  %1374 = vmatprep.subr.mxu1 %v1660_v12 }
 0x3b8   :  { %1371 = vmatprep.mubr.msk.f32.mxu1 %vm875_vm2, %v782_v7 }
 0x473   :  { %v1333_v50 = vpop.f32.mrf.mxu1 }
 0x474   :  { %v692_v55 = vadd.f32 %v1333_v50, %v1790_v9  ;;  %v783_v9 = vld [vmem:[%s1849_s0 + $0x8] sm:$0xff] }
 0x475   :  { %v672_v51 = vpop.f32.mrf.mxu1  ;;  %1372 = vmatmul.mubr.msk.f32.vlgmr.msra.gmra.mxu1 %vm875_vm2, %v783_v9 }
 0x476   :  { %v691_v58 = vadd.f32 %v672_v51, %v1792_v10  ;;  %v696_v60 = vmax.f32 %v692_v55, 0.0  ;;  %1378 = vmatprep.mubr.msk.f32.mxu1 %vm1661_vm3, %v1660_v12 }
 0x477   :  { %v1336_v52 = vpop.f32.mrf.mxu1 }
 0x478   :  { %v694_v53 = vadd.f32 %v1336_v52, %v1794_v11  ;;  %v695_v61 = vmax.f32 %v691_v58, 0.0 }
 0x479   :  { %v682_v54 = vpop.f32.mrf.mxu1 }
 0x47a   :  { %v698_v56 = vmax.f32 %v694_v53, 0.0  ;;  %v693_v57 = vadd.f32 %v682_v54, %v1797_v13 }
 0x47c   :  { %v697_v59 = vmax.f32 %v693_v57, 0.0  ;;  %1337 = vmatprep.subr.mxu0 %v698_v56 }
 0x47d   :  { %1338 = vmatpush3.msra.mxu0 %v698_v56 }
 0x47e   :  { %1339 = vmatprep.subr.mxu0 %v697_v59 }
 0x47f   :  { %1340 = vmatpush3.msra.mxu0 %v697_v59 }
 0x480   :  { %1341 = vmatprep.subr.mxu0 %v696_v60 }
 0x481   :  { %1342 = vmatpush3.msra.mxu0 %v696_v60 }
 0x482   :  { %1343 = vmatprep.subr.mxu0 %v695_v61 }
 0x483   :  { %1344 = vmatpush3.msra.mxu0 %v695_v61 }
 0x484   :  { %1346 = vmatmul.mubr.msk.f32.vlgmr.msra.gmra.mxu0 %vm192_vm0, %v700_v62  ;;  %1348 = vmatprep.subr.mxu0 %v793_v63 }
 0x485   :  { %1349 = vmatpush3.msra.mxu0 %v793_v63 }
 0x486   :  { %1350 = vmatprep.subr.mxu0 %v792_v0 }
 0x487   :  { %1351 = vmatpush3.msra.mxu0 %v792_v0 }
 0x488   :  { %1352 = vmatprep.subr.mxu0 %v791_v1 }
 0x489   :  { %1353 = vmatpush3.msra.mxu0 %v791_v1 }
 0x48a   :  { %1354 = vmatprep.subr.mxu0 %v790_v2 }
 0x48b   :  { %1355 = vmatpush3.msra.mxu0 %v790_v2 }
 0x48c   :  { %1356 = vmatprep.subr.mxu0 %v789_v3 }
 0x48d   :  { %1357 = vmatpush3.msra.mxu0 %v789_v3 }
 0x48e   :  { %1358 = vmatprep.subr.mxu0 %v788_v4 }
 0x48f   :  { %1359 = vmatpush3.msra.mxu0 %v788_v4 }
 0x490   :  { %1360 = vmatprep.subr.mxu0 %v787_v5 }
 0x491   :  { %1361 = vmatpush3.msra.mxu0 %v787_v5 }
 0x492   :  { %1362 = vmatprep.subr.mxu0 %v786_v8 }
 0x493   :  { %1363 = vmatpush3.msra.mxu0 %v786_v8 }
 0x535   :  { %v1373_v13 = vpop.f32.mrf.mxu1 }
 0x537   :  { %v948_v17 = vpop.f32.mrf.mxu1 }
 0x544   :  { %v1347_v10 = vpop.f32.mrf.mxu0 }
 0x546   :  { %v773_v11 = vpop.f32.mrf.mxu0 }
 0x547   :  { %1364 = vmatprep.mubr.msk.f32.mxu0 %vm403_vm1, %v773_v11 }
 0x548   :  { %1365 = vmatmul.mubr.msk.f32.vlgmr.msra.gmra.mxu0 %vm403_vm1, %v1347_v10 }
 0x608   :  { %v1366_v14 = vpop.f32.mrf.mxu0 }
 0x609   :  { %v954_v16 = vadd.f32 %v1373_v13, %v1366_v14 }
 0x60a   :  { %v866_v18 = vpop.f32.mrf.mxu0 }
 0x60b   :  { %v965_v19 = vadd.f32 %v1167_v15, %v954_v16  ;;  %v949_v20 = vadd.f32 %v948_v17, %v866_v18 }
 0x60d   :  { %v967_v21 = vmax.f32 %v965_v19, 0.0  ;;  %v964_v22 = vadd.f32 %v1167_v15, %v949_v20 }
 0x60f   :  { %v966_v23 = vmax.f32 %v964_v22, 0.0  ;;  %1375 = vmatpush3.msra.mxu1 %v967_v21 }
 0x610   :  { %1376 = vmatprep.subr.mxu1 %v1660_v12 }
 0x611   :  { %1377 = vmatpush3.msra.mxu1 %v966_v23 }
 0x612   :  { %1379 = vmatmul.mubr.msk.f32.vlgmr.msra.gmra.mxu1 %vm875_vm2, %v968_v24  ;;  %1381 = vmatprep.subr.mxu1 %v1660_v12 }
 0x613   :  { %1382 = vmatpush3.msra.mxu1 %v1049_v25  ;;  %1397 = vmatprep.mubr.msk.f32.mxu1 %vm1661_vm3, %v1660_v12 }
 0x614   :  { %1383 = vmatprep.subr.mxu1 %v1660_v12 }
 0x615   :  { %1384 = vmatpush3.msra.mxu1 %v1048_v26 }
 0x616   :  { %1385 = vmatprep.subr.mxu1 %v1660_v12 }
 0x617   :  { %1386 = vmatpush3.msra.mxu1 %v1047_v27 }
 0x618   :  { %1387 = vmatprep.subr.mxu1 %v1660_v12 }
 0x619   :  { %1388 = vmatpush3.msra.mxu1 %v1046_v28 }
 0x61a   :  { %1389 = vmatprep.subr.mxu1 %v1660_v12 }
 0x61b   :  { %1390 = vmatpush3.msra.mxu1 %v1045_v29 }
 0x61c   :  { %1391 = vmatprep.subr.mxu1 %v1660_v12 }
 0x61d   :  { %1392 = vmatpush3.msra.mxu1 %v1044_v30 }
 0x61e   :  { %1393 = vmatprep.subr.mxu1 %v1660_v12 }
 0x61f   :  { %1394 = vmatpush3.msra.mxu1 %v1043_v31 }
 0x620   :  { %1395 = vmatprep.subr.mxu1 %v1660_v12 }
 0x621   :  { %1396 = vmatpush3.msra.mxu1 %v1042_v32 }
 0x6d2   :  { %v1038_v33 = vpop.f32.mrf.mxu1 }
 0x6d3   :  { %1398 = vmatmul.mubr.msk.f32.vlgmr.msra.gmra.mxu1 %vm403_vm1, %v1038_v33 }
 0x6d4   :  { %v1380_v34 = vpop.f32.mrf.mxu1 }
 0x793   :  { %v1126_v36 = vpop.f32.mrf.mxu1 }
 0x794   :  { %v1127_v37 = vadd.f32 %v1169_v35, %v1126_v36 }
 0x795   :  { %v1399_v38 = vpop.f32.mrf.mxu1 }
 0x796   :  { %1130 = vst [vmem:[%s1861_s12] sm:$0x3] %v1127_v37 }
 0x797   :  { %1135 = vsyncpa [#allocation3], 1 }
 0x798   :  { %1136 = vsyncpa [#allocation5], 1 }
 0x799   :  { %1137 = vsyncpa [#allocation8], 1 }
 0x79a   :  { %1138 = vsyncpa [#allocation11], 1 }
 0x79b   :  { %1139 = vsyncpa [#allocation14], 1 }
 0x79c   :  { %1140 = vsyncpa [#allocation17], 1 }

</bundles_post_ra>
